<compile_context>
chip_gen: v5e
topology: v5e:2x2
jax: 0.10.0
libtpu: 0.0.40
codegen_flags: <defaults>
</compile_context>

<pallas_src>
import functools

import jax
import jax.numpy as jnp
from jax.experimental import pallas as pl
from jax.experimental.pallas import tpu as pltpu

NUM_TILE_TYPES = 34
NUM_CLASSES = NUM_TILE_TYPES + 1      # 35
EARLY_ROUND = 6
LATE_ROUND = 12


def _round_up(x, m):
    return (x + m - 1) // m * m


def _fuzzy_label_loss_kernel(logits_ref, tgt_ref, turn_ref, out_ref, *,
                             total_rows, has_partial):
    """One batch tile: per-row CE * turn weight, summed, splatted to (8,128)."""
    i = pl.program_id(0)

    logits = logits_ref[...].astype(jnp.float32)          # (TB, C) f32 for stability
    tb, c = logits.shape

    # ---- per-row cross entropy (numerically stable log-softmax) ----
    # Row-max is the only cross-lane reduction left on the XLU.
    m = jnp.max(logits, axis=-1, keepdims=True)            # (TB, 1)
    shifted = logits - m                                    # (TB, C)
    es = jnp.exp(shifted)                                   # (TB, C)  (EUP)

    tgt = tgt_ref[...]                                      # (TB, 1) int32 (direct load)
    lane = jax.lax.broadcasted_iota(jnp.int32, (tb, c), 1)  # class index per lane
    sel = jnp.where(lane == tgt, shifted, 0.0)              # (TB, C) target-logit select

    # Offload both axis=-1 sums to the (idle) MXU: dot against a ones column.
    ones_c = jnp.ones((c, 1), dtype=jnp.float32)
    sum_exp = jnp.dot(es, ones_c, preferred_element_type=jnp.float32)     # (TB, 1)
    tgt_logit = jnp.dot(sel, ones_c, preferred_element_type=jnp.float32)  # (TB, 1)

    losses = jnp.log(sum_exp) - tgt_logit                   # (TB, 1) = -log p[target]

    # ---- fuzzy (turn-dependent) weights: clip reproduces the 3-branch logic ----
    t = turn_ref[...].astype(jnp.float32)                   # (TB, 1)
    w = 0.7 + 0.3 * (t - EARLY_ROUND) / (LATE_ROUND - EARLY_ROUND)
    w = jnp.clip(w, 0.7, 1.0)

    contrib = losses * w                                     # (TB, 1)

    def _write(vals):
        # per-tile partial sum splatted over a lane-dense (8,128) output tile
        out_ref[...] = jnp.broadcast_to(jnp.sum(vals, keepdims=True), (8, 128))

    if has_partial:
        last = pl.num_programs(0) - 1

        @pl.when(i != last)
        def _():
            _write(contrib)                                  # unmasked fast path

        @pl.when(i == last)
        def _():
            row = jax.lax.broadcasted_iota(jnp.int32, (tb, 1), 0)
            valid = (i * tb + row) < total_rows
            # select (NOT multiply-by-mask): OOB-padded rows may hold garbage.
            _write(jnp.where(valid, contrib, 0.0))
    else:
        _write(contrib)


def fuzzy_label_loss(logits, targets, turns, *, block_rows=4096,
                     xla_fallback_below=0):
    """logits: (B, C) f32/bf16 (kept in wire dtype), targets: (B,) int,
    turns: (B,) int  ->  scalar f32 weighted-mean CE.

    block_rows: batch tile size (multiple of 8).  4096 amortizes per-grid-step
    overhead to <5%; going past ~8192 needs a larger vmem_limit_bytes because
    the class axis lane-pads every (tb, *) buffer to 128 lanes.
    xla_fallback_below: below this batch size dispatch plain XLA (the kernel is
    pure fixed overhead at tiny B).  0 = always use Pallas.
    """
    B, C = logits.shape

    if B < xla_fallback_below:
        return _reference(logits, targets, turns)

    targets = targets.astype(jnp.int32).reshape(B, 1)   # (B,1): free reshape, no stack
    turns = turns.astype(jnp.int32).reshape(B, 1)

    assert block_rows % 8 == 0, "block_rows must be a multiple of 8"
    if B <= block_rows:
        if B > 16:
            # Split so the grid has >= 2 steps: on v7x both TensorCores get a
            # share of the batch under dimension_semantics=("parallel",).
            tb = _round_up((B + 1) // 2, 8)
        else:
            tb = B                                      # tiny batch: single tile
    else:
        tb = block_rows
    num_tiles = (B + tb - 1) // tb
    has_partial = (B % tb) != 0

    kernel = functools.partial(_fuzzy_label_loss_kernel,
                               total_rows=B, has_partial=has_partial)

    partials = pl.pallas_call(
        kernel,
        grid=(num_tiles,),
        out_shape=jax.ShapeDtypeStruct((num_tiles * 8, 128), jnp.float32),
        in_specs=[
            pl.BlockSpec((tb, C), lambda i: (i, 0)),    # logits tile
            pl.BlockSpec((tb, 1), lambda i: (i, 0)),    # targets tile
            pl.BlockSpec((tb, 1), lambda i: (i, 0)),    # turns tile
        ],
        out_specs=pl.BlockSpec((8, 128), lambda i: (i, 0)),
        compiler_params=pltpu.CompilerParams(
            # Disjoint output tiles per grid step -> batch axis shardable
            # across both TensorCores on v7x; neutral on v5e/v6e.
            dimension_semantics=("parallel",),
            # Lane-padded VMEM math (see header): ~12 MiB double-buffered
            # inputs + a few MiB intermediates at tb=4096.  48 MiB is safely
            # below v7x's 64 MiB physical and v5e/v6e's 128 MiB, and above
            # v5e's 16 MiB default scoped limit.
            vmem_limit_bytes=48 * 1024 * 1024,
        ),
    )(logits, targets, turns)

    # Each tile splatted its partial sum across an (8,128) slab; take one
    # representative element per tile and finish the mean in XLA (tiny op).
    per_tile = partials.reshape(num_tiles, 8, 128)[:, 0, 0]
    return jnp.sum(per_tile) / jnp.float32(B)


def _reference(logits, targets, turns):
    # Pure-JAX reference of the PyTorch forward (also the tiny-batch fallback).
    logits = logits.astype(jnp.float32)
    logz = jax.nn.logsumexp(logits, axis=-1)
    tgt_logit = jnp.take_along_axis(
        logits, targets[:, None].astype(jnp.int32), axis=-1)[:, 0]
    losses = logz - tgt_logit
    t = turns.astype(jnp.float32)
    w = jnp.clip(0.7 + 0.3 * (t - EARLY_ROUND) / (LATE_ROUND - EARLY_ROUND), 0.7, 1.0)
    return jnp.mean(losses * w)


if __name__ == "__main__":
    key = jax.random.PRNGKey(0)
    k1, k2, k3 = jax.random.split(key, 3)

    # 1) small single-tile path (B=8, C=35)
    B = 8
    logits = jax.random.normal(k1, (B, NUM_CLASSES), dtype=jnp.float32)
    targets = jax.random.randint(k2, (B,), 0, NUM_CLASSES, dtype=jnp.int32)
    turns = jax.random.randint(k3, (B,), 0, 20, dtype=jnp.int32)  # early/mid/late
    loss = fuzzy_label_loss(logits, targets, turns)
    jax.block_until_ready(loss)
    ref = _reference(logits, targets, turns)
    assert jnp.allclose(loss, ref, rtol=1e-5, atol=1e-5), (loss, ref)

    # 2) multi-tile path with a partial last tile (grid + pl.when masking path)
    B2 = 20
    k4, k5, k6 = jax.random.split(k1, 3)
    logits2 = jax.random.normal(k4, (B2, NUM_CLASSES), dtype=jnp.float32)
    targets2 = jax.random.randint(k5, (B2,), 0, NUM_CLASSES, dtype=jnp.int32)
    turns2 = jax.random.randint(k6, (B2,), 0, 20, dtype=jnp.int32)
    loss2 = fuzzy_label_loss(logits2, targets2, turns2, block_rows=8)
    jax.block_until_ready(loss2)
    ref2 = _reference(logits2, targets2, turns2)
    assert jnp.allclose(loss2, ref2, rtol=1e-5, atol=1e-5), (loss2, ref2)

    # 3) default block_rows with the automatic 2-way split (dual-core path on
    #    v7x) and bf16 logits kept on the wire.
    loss3 = fuzzy_label_loss(logits2.astype(jnp.bfloat16), targets2, turns2)
    jax.block_until_ready(loss3)
    ref3 = _reference(logits2.astype(jnp.bfloat16), targets2, turns2)
    assert jnp.allclose(loss3, ref3, rtol=1e-4, atol=1e-4), (loss3, ref3)

    print("KERNEL_OK")
</pallas_src>

<mosaic_0001>
module attributes {stable_mosaic.version = 11 : i64} {
  func.func @_fuzzy_label_loss_kernel(%arg0: i32, %arg1: memref<8x35xf32, #tpu.memory_space<vmem>>, %arg2: memref<8x1xi32, #tpu.memory_space<vmem>>, %arg3: memref<8x1xi32, #tpu.memory_space<vmem>>, %arg4: memref<8x128xf32, #tpu.memory_space<vmem>>) attributes {dimension_semantics = [#tpu.dimension_semantics<parallel>], iteration_bounds = array<i64: 1>, scalar_prefetch = 0 : i64, scratch_operands = 0 : i64, tpu.core_type = #tpu.core_type<tc>, window_params = [{transform_indices = @transform_0, window_bounds = array<i64: 8, 35>}, {transform_indices = @transform_1, window_bounds = array<i64: 8, 1>}, {transform_indices = @transform_2, window_bounds = array<i64: 8, 1>}, {transform_indices = @transform_3, window_bounds = array<i64: 8, 128>}]} {
    %c0 = arith.constant 0 : index
    %c0_0 = arith.constant 0 : index
    %0 = vector.load %arg1[%c0, %c0_0] : memref<8x35xf32, #tpu.memory_space<vmem>>, vector<8x35xf32>
    %cst = arith.constant dense<0xFF800000> : vector<8xf32>
    %1 = vector.multi_reduction <maximumf>, %0, %cst [1] : vector<8x35xf32> to vector<8xf32>
    %2 = vector.shape_cast %1 : vector<8xf32> to vector<8x1xf32>
    %3 = vector.broadcast %2 : vector<8x1xf32> to vector<8x35xf32>
    %4 = arith.subf %0, %3 : vector<8x35xf32>
    %5 = math.exp %4 : vector<8x35xf32>
    %c0_1 = arith.constant 0 : index
    %c0_2 = arith.constant 0 : index
    %6 = vector.load %arg2[%c0_1, %c0_2] : memref<8x1xi32, #tpu.memory_space<vmem>>, vector<8x1xi32>
    %7 = tpu.iota {dimensions = array<i32: 1>} : vector<8x35xi32>
    %8 = vector.broadcast %6 : vector<8x1xi32> to vector<8x35xi32>
    %9 = arith.cmpi eq, %7, %8 : vector<8x35xi32>
    %cst_3 = arith.constant 0.000000e+00 : f32
    %10 = vector.broadcast %cst_3 : f32 to vector<8x35xf32>
    %11 = arith.select %9, %4, %10 : vector<8x35xi1>, vector<8x35xf32>
    %cst_4 = arith.constant 1.000000e+00 : f32
    %12 = vector.broadcast %cst_4 : f32 to vector<35x1xf32>
    %cst_5 = arith.constant dense<0.000000e+00> : vector<8x1xf32>
    %13 = tpu.matmul %5, %12, %cst_5 {dimension_numbers = #tpu.dot_dimension_numbers<[1], [0], [0], [1], [0, 0, 1, 1], [], []>} : vector<8x35xf32>, vector<35x1xf32>, vector<8x1xf32> -> vector<8x1xf32>
    %cst_6 = arith.constant dense<0.000000e+00> : vector<8x1xf32>
    %14 = tpu.matmul %11, %12, %cst_6 {dimension_numbers = #tpu.dot_dimension_numbers<[1], [0], [0], [1], [0, 0, 1, 1], [], []>} : vector<8x35xf32>, vector<35x1xf32>, vector<8x1xf32> -> vector<8x1xf32>
    %15 = math.log %13 : vector<8x1xf32>
    %16 = arith.subf %15, %14 : vector<8x1xf32>
    %c0_7 = arith.constant 0 : index
    %c0_8 = arith.constant 0 : index
    %17 = vector.load %arg3[%c0_7, %c0_8] : memref<8x1xi32, #tpu.memory_space<vmem>>, vector<8x1xi32>
    %18 = arith.sitofp %17 : vector<8x1xi32> to vector<8x1xf32>
    %cst_9 = arith.constant 6.000000e+00 : f32
    %19 = vector.broadcast %cst_9 : f32 to vector<8x1xf32>
    %20 = arith.subf %18, %19 : vector<8x1xf32>
    %cst_10 = arith.constant 3.000000e-01 : f32
    %21 = vector.broadcast %cst_10 : f32 to vector<8x1xf32>
    %22 = arith.mulf %21, %20 : vector<8x1xf32>
    %cst_11 = arith.constant 6.000000e+00 : f32
    %23 = vector.broadcast %cst_11 : f32 to vector<8x1xf32>
    %24 = arith.divf %22, %23 : vector<8x1xf32>
    %cst_12 = arith.constant 0.699999988 : f32
    %25 = vector.broadcast %cst_12 : f32 to vector<8x1xf32>
    %26 = arith.addf %25, %24 : vector<8x1xf32>
    %cst_13 = arith.constant 0.699999988 : f32
    %cst_14 = arith.constant 1.000000e+00 : f32
    %27 = vector.broadcast %cst_13 : f32 to vector<8x1xf32>
    %28 = arith.maximumf %27, %26 : vector<8x1xf32>
    %29 = vector.broadcast %cst_14 : f32 to vector<8x1xf32>
    %30 = arith.minimumf %29, %28 : vector<8x1xf32>
    %31 = arith.mulf %16, %30 : vector<8x1xf32>
    %32 = vector.shape_cast %31 : vector<8x1xf32> to vector<1x8x1xf32>
    %cst_15 = arith.constant dense<0.000000e+00> : vector<1xf32>
    %33 = vector.multi_reduction <add>, %32, %cst_15 [1, 2] : vector<1x8x1xf32> to vector<1xf32>
    %34 = vector.shape_cast %33 : vector<1xf32> to vector<1x1x1xf32>
    %35 = vector.extract %34[0, 0, 0] : f32 from vector<1x1x1xf32>
    %36 = vector.broadcast %35 : f32 to vector<1x1xf32>
    %37 = vector.shape_cast %36 : vector<1x1xf32> to vector<1x1xf32>
    %38 = vector.broadcast %37 : vector<1x1xf32> to vector<8x128xf32>
    %c0_16 = arith.constant 0 : index
    %c0_17 = arith.constant 0 : index
    %39 = vector.load %arg4[%c0_16, %c0_17] : memref<8x128xf32, #tpu.memory_space<vmem>>, vector<8x128xf32>
    tpu.vector_store %arg4[%c0_16, %c0_17], %38 {strides = array<i32>} : memref<8x128xf32, #tpu.memory_space<vmem>>, vector<8x128xf32>,
    return
  }
  func.func @transform_0(%arg0: i32) -> (i32, i32) {
    %c0_i32 = arith.constant 0 : i32
    %c0_i32_0 = arith.constant 0 : i32
    return %arg0, %c0_i32 : i32, i32
  }
  func.func @transform_1(%arg0: i32) -> (i32, i32) {
    %c0_i32 = arith.constant 0 : i32
    %c0_i32_0 = arith.constant 0 : i32
    return %arg0, %c0_i32 : i32, i32
  }
  func.func @transform_2(%arg0: i32) -> (i32, i32) {
    %c0_i32 = arith.constant 0 : i32
    %c0_i32_0 = arith.constant 0 : i32
    return %arg0, %c0_i32 : i32, i32
  }
  func.func @transform_3(%arg0: i32) -> (i32, i32) {
    %c0_i32 = arith.constant 0 : i32
    %c0_i32_0 = arith.constant 0 : i32
    return %arg0, %c0_i32 : i32, i32
  }
}

</mosaic_0001>

<bundles_post_ra>
// kernel: tpu_custom_call.1
= control target key start
LH: loop header
LB: loop body
LE: loop exit
PB: predicated region body
PF: predicated region fallthrough
CT: control target
= control target key end

     0   :  { %vm16_vm0 = vcmask 285696   ;;  %s212_s0 = inlined_call_operand.vmem [shape: f32[8,35], index: 0, kind: input, shape index: {}]   ;;  %s213_s1 = inlined_call_operand.vmem [shape: s32[8,1], index: 1, kind: input, shape index: {}]   ;;  %s214_s2 = inlined_call_operand.vmem [shape: s32[8,1], index: 2, kind: input, shape index: {}]   ;;  %s215_s3 = inlined_call_operand.hbm [shape: f32[8,128], index: 3, kind: output, shape index: {}]  }
   0x1   :  { %v15_v0 = vld [vmem:[%s212_s0] sm:$0xff] }
   0x2   :  { %8 = vsyncpa [#allocation3], 0  ;;  %v17_v1 = vsel %vm16_vm0, %v15_v0, -inf  ;;  %v173_v2 = vmov 0   ;;  %v23_v3 = vld [vmem:[%s213_s1] sm:$0xff]  ;;  %vm34_vm1 = vcmask 1042432   ;;  %v24_v9 = vlaneseq }
   0x3   :  { %140 = vset.pattern.permute.xlu0 %v173_v2  ;;  %v174_v4 = vmov 1.0   ;;  %v175_v13 = vmov 6.0   ;;  %v84_v16 = vld [vmem:[%s214_s2] sm:$0xff]  ;;  %vm100_vm4 = vcmask 7168   ;;  %s176_s2 = smov [#allocation2]   ;;  %s120_s19 = sshll.u32 %s215_s3, 4  ;;  %s121_s19 = int_to_ptr.hbm [resolvable:$true] %s120_s19 }
   0x4   :  { %18 = vmax.xlane.f32.xlu0 %v17_v1  ;;  %129 = vmatpush.msk.msra.mxu0 %vm34_vm1, %v174_v4  ;;  %v25_v10 = vand.u32 127, %v24_v9  ;;  %v85_v18 = vcvt.s32.f32 %v84_v16  ;;  %s118_s16 = sshll.u32 %s176_s2, 4  ;;  %s119_s16 = int_to_ptr.vmem [resolvable:$true] %s118_s16 }
   0x5   :  { %131 = vmatpush.msk.msra.mxu1 %vm34_vm1, %v174_v4 }
   0x6   :  { %50 = vmatpush.msra.mxu0 %v174_v4  ;;  %v133_v20 = vadd.f32 -6.0, %v85_v18 }
   0x7   :  { %73 = vmatpush.msra.mxu1 %v174_v4 }
   0x8   :  { %51 = vmatpush.msra.mxu0 %v174_v4  ;;  %v87_v22 = vmul.f32 0.3, %v133_v20 }
   0x9   :  { %74 = vmatpush.msra.mxu1 %v174_v4 }
   0xa   :  { %52 = vmatpush.msra.mxu0 %v174_v4 }
   0xb   :  { %75 = vmatpush.msra.mxu1 %v174_v4 }
   0xc   :  { %53 = vmatpush.msra.mxu0 %v174_v4 }
   0xd   :  { %76 = vmatpush.msra.mxu1 %v174_v4 }
  0x18   :  { %27 = vperm.xlu0 %140, %v23_v3  }
  0x77   :  { %v19_v5 = vpop.xlane.xlu0 %18 }
  0x78   :  { %v20_v6 = vsub.f32 %v15_v0, %v19_v5 }
  0x7a   :  { %v21_v7 = vmul.f32 1.442695, %v20_v6 }
  0x7c   :  { %141 = vpow2.f32 %v21_v7 }
  0x7d   :  { %143 = vrcp.f32 %v175_v13 }
  0x82   :  { %v142_v8 = vpop.eup %141 }
  0x83   :  { %130 = vmatmul.msk.f32.vlgmr.msra.gmra.mxu0 %vm16_vm0, %v142_v8  ;;  %v144_v14 = vpop.eup %143 }
  0x84   :  { %v89_v15 = vmul.f32 6.0, %v144_v14  ;;  %vm93_vm3 = vweird.f32 %v144_v14 }
  0x86   :  { %v90_v17 = vsub.f32 1.0, %v89_v15 }
  0x88   :  { %v91_v19 = vmul.f32 %v144_v14, %v90_v17 }
  0x8a   :  { %v28_v11 = vpop.permute.xlu0 %27  ;;  %v92_v21 = vadd.f32 %v144_v14, %v91_v19 }
  0x8b   :  { %vm29_vm2 = vcmp.eq.s32.totalorder %v25_v10, %v28_v11 }
  0x8c   :  { %v30_v12 = vsel %vm29_vm2, %v20_v6, 0.0  ;;  %v94_v23 = vsel %vm93_vm3, %v144_v14, %v92_v21 }
  0x8d   :  { %132 = vmatmul.msk.f32.vlgmr.msra.gmra.mxu1 %vm16_vm0, %v30_v12  ;;  %v95_v24 = vmul.f32 %v94_v23, %v87_v22 }
  0x8f   :  { %v96_v26 = vadd.f32 0.7, %v95_v24 }
  0x91   :  { %v97_v27 = vmax.f32 %v96_v26, 0.7 }
  0x93   :  { %v98_v30 = vmin.f32 %v97_v27, 1.0 }
 0x100   :  { %v55_v25 = vpop.f32.mrf.mxu0 }
 0x101   :  { %145 = vlog2.f32 %v55_v25 }
 0x107   :  { %v146_v28 = vpop.eup %145 }
 0x108   :  { %v82_v29 = vmul.f32 0.6931472, %v146_v28 }
 0x10a   :  { %v78_v31 = vpop.f32.mrf.mxu1 }
 0x10b   :  { %v83_v32 = vsub.f32 %v82_v29, %v78_v31 }
 0x10d   :  { %v99_v33 = vmul.f32 %v98_v30, %v83_v32 }
 0x10f   :  { %v101_v34 = vsel %vm100_vm4, %v99_v33, 0.0 }
 0x110   :  { %102 = vadd.xlane.f32.xlu1 %v101_v34 }
 0x183   :  { %v103_v35 = vpop.xlane.xlu1 %102 }
 0x184   :  { %v104_v36 = vrot.slane %v103_v35, 4 }
 0x186   :  { %v105_v37 = vadd.f32 %v104_v36, %v103_v35 }
 0x188   :  { %v106_v38 = vrot.slane %v105_v37, 2 }
 0x18a   :  { %v107_v39 = vadd.f32 %v106_v38, %v105_v37 }
 0x18c   :  { %v108_v40 = vrot.slane %v107_v39, 1 }
 0x18e   :  { %v109_v41 = vadd.f32 %v108_v40, %v107_v39 }
 0x190   :  { %134 = vpush %v109_v41 }
 0x1c1   :  { %s135_s20 = spop %134 }
 0x1c2   :  { %v111_v42 = vstv %s135_s20 }
 0x1c3   :  { %112 = vst [vmem:[#allocation2] sm:$0xff] %v111_v42 }
 0x1c4   :  { %123 = dma.vmem_to_hbm [thread:$0]  %s119_s16, 128, %s121_s19, [#allocation3]  }
 0x1c5   :  { %171 = dma.done.wait [#allocation3], 128  }
 0x1c6   :  { %172 = vsyncadd [#allocation3], 4294967168 }
 0x1c7   :  { %128 = vsyncpa [#allocation3], 1 }

</bundles_post_ra>
